<compile_context>
chip_gen: v7x
topology: tpu7x:2x2x1
jax: 0.10.0
libtpu: 0.0.40
codegen_flags: <defaults>
</compile_context>

<pallas_src>
import functools

import jax
import jax.numpy as jnp
from jax.experimental import pallas as pl
from jax.experimental.pallas import tpu as pltpu


# ----------------------------------------------------------------------------
# Fused Pallas kernel: depthwise3x3 + (1x1 conv . BN) + ReLU
# ----------------------------------------------------------------------------
def _xconv_bn_relu_kernel(x_ref, dww_ref, dwb_ref, w1_ref, b1_ref, o_ref,
                          *, bt, H, W, Cin, Cout):
    """
    x_ref  : (bt, Cin, P)   P = H*W, spatial flattened onto the lane axis
    dww_ref: (Cin, 9)       depthwise taps, k = (di+1)*3 + (dj+1)
    dwb_ref: (Cin, 1)       depthwise bias
    w1_ref : (Cout, Cin)    1x1 conv weight with BN scale folded in
    b1_ref : (Cout, 1)      1x1 conv bias with BN shift folded in
    o_ref  : (bt, Cout, P)
    """
    P = H * W
    f32 = jnp.float32

    # ---- parameters (tiny, loaded once; taps hoisted out of the 3x3 loop) --
    dww = dww_ref[...].astype(f32)                        # (Cin, 9)
    dwb = dwb_ref[...].astype(f32)                        # (Cin, 1)
    w1 = w1_ref[...].astype(f32)                          # (Cout, Cin)
    b1 = b1_ref[...].astype(f32)                          # (Cout, 1)
    taps = [dww[:, k:k + 1] for k in range(9)]            # each (Cin, 1)

    # ---- boundary masks on the flattened spatial (lane) axis, hoisted ------
    pos = jax.lax.broadcasted_iota(jnp.int32, (1, P), 1)
    if (W & (W - 1)) == 0:
        col = jnp.bitwise_and(pos, W - 1)
    else:
        # TODO(synk): non power-of-two W relies on s32 rem-by-constant lowering.
        col = jax.lax.rem(pos, jnp.int32(W))
    edge = {
        -1: {"r": (pos >= W).astype(f32), "c": (col >= 1).astype(f32)},
        +1: {"r": (pos < (H - 1) * W).astype(f32),
             "c": (col <= W - 2).astype(f32)},
    }

    def tap_scale(di, dj):                                # (1, P) f32 or None
        m = None
        if di != 0:
            m = edge[di]["r"]
        if dj != 0:
            mc = edge[dj]["c"]
            m = mc if m is None else m * mc
        return m

    masks = {(di, dj): tap_scale(di, dj)
             for di in (-1, 0, 1) for dj in (-1, 0, 1)}

    # ---- per-sample compute (static unroll over samples in this block) -----
    for s in range(bt):
        x = x_ref[s].astype(f32)                          # (Cin, P)

        # Depthwise 3x3, stride 1, pad 1: nine static lane rolls (XLU) with
        # f32 boundary masks zeroing window positions outside the image, and
        # per-channel tap MACs on the VPU.
        acc = jnp.broadcast_to(dwb, (Cin, P))
        for di in (-1, 0, 1):
            for dj in (-1, 0, 1):
                k = (di + 1) * 3 + (dj + 1)
                sh = (-(di * W + dj)) % P                 # read x[p + di*W + dj]
                xs = pltpu.roll(x, sh, axis=1) if sh else x
                m = masks[(di, dj)]
                if m is not None:
                    xs = xs * m
                acc = acc + xs * taps[k]

        # 1x1 conv + folded BatchNorm, then ReLU.
        if Cin <= 16:
            # K (=Cin) is tiny: Cin broadcast-MACs on the VPU beat an almost
            # empty MXU matmul (no fill/drain) and stay exact f32.
            z = jnp.broadcast_to(b1, (Cout, P))
            for c in range(Cin):
                z = z + w1[:, c:c + 1] * acc[c:c + 1, :]
        else:
            # Lane-dense matmul: (Cout, Cin) @ (Cin, P), N = P >= 256.
            z = jnp.dot(w1, acc, preferred_element_type=f32) + b1

        o_ref[s] = jnp.maximum(z, 0.0).astype(o_ref.dtype)


# ----------------------------------------------------------------------------
# Wrapper: free reshapes only (no transpose / pad), BN folding, grid choice
# ----------------------------------------------------------------------------
def xconv_bn_relu(params, x_nchw, *, eps=1e-5):
    """XConvBnRelu forward.  x: (B, Cin, H, W) NCHW -> (B, Cout, H, W)."""
    B, Cin, H, W = x_nchw.shape
    Cout = params["pw_w"].shape[0]
    P = H * W

    # NCHW is already channel-major; flattening HxW is a layout-preserving
    # (free) reshape, so channels land on sublanes and spatial on the lanes.
    x2 = x_nchw.reshape(B, Cin, P)

    # Depthwise taps (Cin, 1, 3, 3) -> one (Cin, 9) block, k = (di+1)*3+(dj+1).
    dww = params["dw_w"].reshape(Cin, 9)
    dwb = params["dw_b"].reshape(Cin, 1)

    # Fold eval-mode BatchNorm into the 1x1 conv:
    #   BN(z) = z*s + (beta - mean*s),  s = gamma / sqrt(var + eps)
    #   => W' = W1 * s (per out-channel), b' = (b1 - mean)*s + beta
    s = params["bn_g"] * jax.lax.rsqrt(params["bn_var"] + eps)           # (Cout,)
    w1 = params["pw_w"][:, :, 0, 0] * s[:, None]                         # (Cout, Cin)
    b1 = ((params["pw_b"] - params["bn_mean"]) * s
          + params["bn_b"]).reshape(Cout, 1)

    # Samples per grid step: whole batch in one step when it comfortably fits
    # VMEM (single-core v5e/v6e pay ~0.35us per grid step); otherwise grid
    # over sample groups so both v7x TensorCores get parallel work.
    per_sample_bytes = 4 * P * (Cin + Cout)
    budget = 2 * 1024 * 1024
    bt = 1
    for cand in range(1, B + 1):
        if B % cand == 0 and cand <= 8 and cand * per_sample_bytes <= budget:
            bt = cand
    nsteps = B // bt
    # TODO(synk): at production sizes (large H*W) add a spatial row-tile grid
    # axis with a 1-row halo and re-derive tile sizes for v7x's 64 MiB VMEM.

    itemsize = x2.dtype.itemsize
    flops = B * (2 * 9 * P * Cin + 2 * P * Cin * Cout)
    bytes_accessed = (x2.size * itemsize + B * Cout * P * itemsize
                      + 4 * (dww.size + dwb.size + w1.size + b1.size))

    kern = functools.partial(_xconv_bn_relu_kernel,
                             bt=bt, H=H, W=W, Cin=Cin, Cout=Cout)
    out = pl.pallas_call(
        kern,
        out_shape=jax.ShapeDtypeStruct((B, Cout, P), x_nchw.dtype),
        grid=(nsteps,),
        in_specs=[
            pl.BlockSpec((bt, Cin, P), lambda b: (b, 0, 0)),
            pl.BlockSpec((Cin, 9), lambda b: (0, 0)),
            pl.BlockSpec((Cin, 1), lambda b: (0, 0)),
            pl.BlockSpec((Cout, Cin), lambda b: (0, 0)),
            pl.BlockSpec((Cout, 1), lambda b: (0, 0)),
        ],
        out_specs=pl.BlockSpec((bt, Cout, P), lambda b: (b, 0, 0)),
        compiler_params=pltpu.CompilerParams(
            dimension_semantics=("parallel",)),
        cost_estimate=pl.CostEstimate(flops=flops, transcendentals=0,
                                      bytes_accessed=bytes_accessed),
    )(x2, dww, dwb, w1, b1)
    return out.reshape(B, Cout, H, W)


# ----------------------------------------------------------------------------
# Pure-JAX reference (for correctness check)
# ----------------------------------------------------------------------------
def reference_forward(params, x, *, eps=1e-5):
    Cin = x.shape[1]
    prec = jax.lax.Precision.HIGHEST
    y = jax.lax.conv_general_dilated(
        x, params["dw_w"], window_strides=(1, 1), padding=((1, 1), (1, 1)),
        dimension_numbers=("NCHW", "OIHW", "NCHW"), feature_group_count=Cin,
        precision=prec)
    y = y + params["dw_b"][None, :, None, None]
    z = jax.lax.conv_general_dilated(
        y, params["pw_w"], window_strides=(1, 1), padding="VALID",
        dimension_numbers=("NCHW", "OIHW", "NCHW"), precision=prec)
    z = z + params["pw_b"][None, :, None, None]
    s = params["bn_g"] / jnp.sqrt(params["bn_var"] + eps)
    z = (z - params["bn_mean"][None, :, None, None]) * s[None, :, None, None] \
        + params["bn_b"][None, :, None, None]
    return jnp.maximum(z, 0.0)


# ----------------------------------------------------------------------------
# main
# ----------------------------------------------------------------------------
if __name__ == "__main__":
    B, Cin, H, W = 2, 4, 16, 16
    Cout = 16

    key = jax.random.PRNGKey(0)
    ks = jax.random.split(key, 9)
    params = {
        "dw_w": 0.2 * jax.random.normal(ks[0], (Cin, 1, 3, 3), jnp.float32),
        "dw_b": 0.05 * jax.random.normal(ks[1], (Cin,), jnp.float32),
        "pw_w": 0.2 * jax.random.normal(ks[2], (Cout, Cin, 1, 1), jnp.float32),
        "pw_b": 0.05 * jax.random.normal(ks[3], (Cout,), jnp.float32),
        # BatchNorm2d (eval-mode / running-stats semantics)
        "bn_g": 1.0 + 0.1 * jax.random.normal(ks[4], (Cout,), jnp.float32),
        "bn_b": 0.1 * jax.random.normal(ks[5], (Cout,), jnp.float32),
        "bn_mean": 0.1 * jax.random.normal(ks[6], (Cout,), jnp.float32),
        "bn_var": jax.random.uniform(ks[7], (Cout,), jnp.float32, 0.5, 1.5),
    }
    x = jax.random.normal(ks[8], (B, Cin, H, W), jnp.float32)  # NCHW input

    fwd = jax.jit(xconv_bn_relu)
    out = jax.block_until_ready(fwd(params, x))

    assert out.shape == (B, Cout, H, W), out.shape
    assert bool(jnp.all(jnp.isfinite(out)))

    # Kernel path is exact f32 (VPU MACs, no bf16 matmul passes); reference
    # uses HIGHEST-precision convs, so a tight tolerance is appropriate.
    ref = reference_forward(params, x)
    err = float(jnp.max(jnp.abs(out - ref)))
    assert err < 2e-3, f"max abs error {err}"

    print("KERNEL_OK")
</pallas_src>

<mosaic_0001>
module attributes {stable_mosaic.version = 11 : i64} {
  func.func @_xconv_bn_relu_kernel(%arg0: i32, %arg1: memref<2x4x256xf32, #tpu.memory_space<vmem>>, %arg2: memref<4x9xf32, #tpu.memory_space<vmem>>, %arg3: memref<4x1xf32, #tpu.memory_space<vmem>>, %arg4: memref<16x4xf32, #tpu.memory_space<vmem>>, %arg5: memref<16x1xf32, #tpu.memory_space<vmem>>, %arg6: memref<2x16x256xf32, #tpu.memory_space<vmem>>) attributes {dimension_semantics = [#tpu.dimension_semantics<parallel>], iteration_bounds = array<i64: 1>, scalar_prefetch = 0 : i64, scratch_operands = 0 : i64, tpu.core_type = #tpu.core_type<tc>, window_params = [{transform_indices = @transform_0, window_bounds = array<i64: 2, 4, 256>}, {pipeline_mode = #tpu.pipeline_mode<synchronous>, transform_indices = @transform_1, window_bounds = array<i64: 4, 9>}, {pipeline_mode = #tpu.pipeline_mode<synchronous>, transform_indices = @transform_2, window_bounds = array<i64: 4, 1>}, {pipeline_mode = #tpu.pipeline_mode<synchronous>, transform_indices = @transform_3, window_bounds = array<i64: 16, 4>}, {pipeline_mode = #tpu.pipeline_mode<synchronous>, transform_indices = @transform_4, window_bounds = array<i64: 16, 1>}, {transform_indices = @transform_5, window_bounds = array<i64: 2, 16, 256>}]} {
    %c0 = arith.constant 0 : index
    %c0_0 = arith.constant 0 : index
    %0 = vector.load %arg2[%c0, %c0_0] : memref<4x9xf32, #tpu.memory_space<vmem>>, vector<4x9xf32>
    %c0_1 = arith.constant 0 : index
    %c0_2 = arith.constant 0 : index
    %1 = vector.load %arg3[%c0_1, %c0_2] : memref<4x1xf32, #tpu.memory_space<vmem>>, vector<4x1xf32>
    %c0_3 = arith.constant 0 : index
    %c0_4 = arith.constant 0 : index
    %2 = vector.load %arg4[%c0_3, %c0_4] : memref<16x4xf32, #tpu.memory_space<vmem>>, vector<16x4xf32>
    %c0_5 = arith.constant 0 : index
    %c0_6 = arith.constant 0 : index
    %3 = vector.load %arg5[%c0_5, %c0_6] : memref<16x1xf32, #tpu.memory_space<vmem>>, vector<16x1xf32>
    %4 = vector.extract_strided_slice %0 {offsets = [0, 0], sizes = [4, 1], strides = [1, 1]} : vector<4x9xf32> to vector<4x1xf32>
    %5 = vector.extract_strided_slice %0 {offsets = [0, 1], sizes = [4, 1], strides = [1, 1]} : vector<4x9xf32> to vector<4x1xf32>
    %6 = vector.extract_strided_slice %0 {offsets = [0, 2], sizes = [4, 1], strides = [1, 1]} : vector<4x9xf32> to vector<4x1xf32>
    %7 = vector.extract_strided_slice %0 {offsets = [0, 3], sizes = [4, 1], strides = [1, 1]} : vector<4x9xf32> to vector<4x1xf32>
    %8 = vector.extract_strided_slice %0 {offsets = [0, 4], sizes = [4, 1], strides = [1, 1]} : vector<4x9xf32> to vector<4x1xf32>
    %9 = vector.extract_strided_slice %0 {offsets = [0, 5], sizes = [4, 1], strides = [1, 1]} : vector<4x9xf32> to vector<4x1xf32>
    %10 = vector.extract_strided_slice %0 {offsets = [0, 6], sizes = [4, 1], strides = [1, 1]} : vector<4x9xf32> to vector<4x1xf32>
    %11 = vector.extract_strided_slice %0 {offsets = [0, 7], sizes = [4, 1], strides = [1, 1]} : vector<4x9xf32> to vector<4x1xf32>
    %12 = vector.extract_strided_slice %0 {offsets = [0, 8], sizes = [4, 1], strides = [1, 1]} : vector<4x9xf32> to vector<4x1xf32>
    %13 = tpu.iota {dimensions = array<i32: 1>} : vector<1x256xi32>
    %c15_i32 = arith.constant 15 : i32
    %14 = vector.broadcast %c15_i32 : i32 to vector<1x256xi32>
    %15 = arith.andi %13, %14 : vector<1x256xi32>
    %c16_i32 = arith.constant 16 : i32
    %16 = vector.broadcast %c16_i32 : i32 to vector<1x256xi32>
    %17 = arith.cmpi sge, %13, %16 : vector<1x256xi32>
    %18 = arith.extui %17 : vector<1x256xi1> to vector<1x256xi32>
    %19 = arith.sitofp %18 : vector<1x256xi32> to vector<1x256xf32>
    %c1_i32 = arith.constant 1 : i32
    %20 = vector.broadcast %c1_i32 : i32 to vector<1x256xi32>
    %21 = arith.cmpi sge, %15, %20 : vector<1x256xi32>
    %22 = arith.extui %21 : vector<1x256xi1> to vector<1x256xi32>
    %23 = arith.sitofp %22 : vector<1x256xi32> to vector<1x256xf32>
    %c240_i32 = arith.constant 240 : i32
    %24 = vector.broadcast %c240_i32 : i32 to vector<1x256xi32>
    %25 = arith.cmpi slt, %13, %24 : vector<1x256xi32>
    %26 = arith.extui %25 : vector<1x256xi1> to vector<1x256xi32>
    %27 = arith.sitofp %26 : vector<1x256xi32> to vector<1x256xf32>
    %c14_i32 = arith.constant 14 : i32
    %28 = vector.broadcast %c14_i32 : i32 to vector<1x256xi32>
    %29 = arith.cmpi sle, %15, %28 : vector<1x256xi32>
    %30 = arith.extui %29 : vector<1x256xi1> to vector<1x256xi32>
    %31 = arith.sitofp %30 : vector<1x256xi32> to vector<1x256xf32>
    %32 = arith.mulf %19, %23 : vector<1x256xf32>
    %33 = arith.mulf %19, %31 : vector<1x256xf32>
    %34 = arith.mulf %27, %23 : vector<1x256xf32>
    %35 = arith.mulf %27, %31 : vector<1x256xf32>
    %c0_7 = arith.constant 0 : index
    %c0_8 = arith.constant 0 : index
    %c0_9 = arith.constant 0 : index
    %36 = vector.load %arg1[%c0_7, %c0_8, %c0_9] : memref<2x4x256xf32, #tpu.memory_space<vmem>>, vector<1x4x256xf32>
    %37 = vector.shape_cast %36 : vector<1x4x256xf32> to vector<4x256xf32>
    %38 = vector.shape_cast %1 : vector<4x1xf32> to vector<4x1xf32>
    %39 = vector.broadcast %38 : vector<4x1xf32> to vector<4x256xf32>
    %c17_i32 = arith.constant 17 : i32
    %40 = tpu.dynamic_rotate %37 by %c17_i32 dim 1 : vector<4x256xf32>, i32 -> vector<4x256xf32>
    %41 = vector.broadcast %32 : vector<1x256xf32> to vector<4x256xf32>
    %42 = arith.mulf %40, %41 : vector<4x256xf32>
    %43 = vector.broadcast %4 : vector<4x1xf32> to vector<4x256xf32>
    %44 = arith.mulf %42, %43 : vector<4x256xf32>
    %45 = arith.addf %39, %44 : vector<4x256xf32>
    %c16_i32_10 = arith.constant 16 : i32
    %46 = tpu.dynamic_rotate %37 by %c16_i32_10 dim 1 : vector<4x256xf32>, i32 -> vector<4x256xf32>
    %47 = vector.broadcast %19 : vector<1x256xf32> to vector<4x256xf32>
    %48 = arith.mulf %46, %47 : vector<4x256xf32>
    %49 = vector.broadcast %5 : vector<4x1xf32> to vector<4x256xf32>
    %50 = arith.mulf %48, %49 : vector<4x256xf32>
    %51 = arith.addf %45, %50 : vector<4x256xf32>
    %c15_i32_11 = arith.constant 15 : i32
    %52 = tpu.dynamic_rotate %37 by %c15_i32_11 dim 1 : vector<4x256xf32>, i32 -> vector<4x256xf32>
    %53 = vector.broadcast %33 : vector<1x256xf32> to vector<4x256xf32>
    %54 = arith.mulf %52, %53 : vector<4x256xf32>
    %55 = vector.broadcast %6 : vector<4x1xf32> to vector<4x256xf32>
    %56 = arith.mulf %54, %55 : vector<4x256xf32>
    %57 = arith.addf %51, %56 : vector<4x256xf32>
    %c1_i32_12 = arith.constant 1 : i32
    %58 = tpu.dynamic_rotate %37 by %c1_i32_12 dim 1 : vector<4x256xf32>, i32 -> vector<4x256xf32>
    %59 = vector.broadcast %23 : vector<1x256xf32> to vector<4x256xf32>
    %60 = arith.mulf %58, %59 : vector<4x256xf32>
    %61 = vector.broadcast %7 : vector<4x1xf32> to vector<4x256xf32>
    %62 = arith.mulf %60, %61 : vector<4x256xf32>
    %63 = arith.addf %57, %62 : vector<4x256xf32>
    %64 = vector.broadcast %8 : vector<4x1xf32> to vector<4x256xf32>
    %65 = arith.mulf %37, %64 : vector<4x256xf32>
    %66 = arith.addf %63, %65 : vector<4x256xf32>
    %c255_i32 = arith.constant 255 : i32
    %67 = tpu.dynamic_rotate %37 by %c255_i32 dim 1 : vector<4x256xf32>, i32 -> vector<4x256xf32>
    %68 = vector.broadcast %31 : vector<1x256xf32> to vector<4x256xf32>
    %69 = arith.mulf %67, %68 : vector<4x256xf32>
    %70 = vector.broadcast %9 : vector<4x1xf32> to vector<4x256xf32>
    %71 = arith.mulf %69, %70 : vector<4x256xf32>
    %72 = arith.addf %66, %71 : vector<4x256xf32>
    %c241_i32 = arith.constant 241 : i32
    %73 = tpu.dynamic_rotate %37 by %c241_i32 dim 1 : vector<4x256xf32>, i32 -> vector<4x256xf32>
    %74 = vector.broadcast %34 : vector<1x256xf32> to vector<4x256xf32>
    %75 = arith.mulf %73, %74 : vector<4x256xf32>
    %76 = vector.broadcast %10 : vector<4x1xf32> to vector<4x256xf32>
    %77 = arith.mulf %75, %76 : vector<4x256xf32>
    %78 = arith.addf %72, %77 : vector<4x256xf32>
    %c240_i32_13 = arith.constant 240 : i32
    %79 = tpu.dynamic_rotate %37 by %c240_i32_13 dim 1 : vector<4x256xf32>, i32 -> vector<4x256xf32>
    %80 = vector.broadcast %27 : vector<1x256xf32> to vector<4x256xf32>
    %81 = arith.mulf %79, %80 : vector<4x256xf32>
    %82 = vector.broadcast %11 : vector<4x1xf32> to vector<4x256xf32>
    %83 = arith.mulf %81, %82 : vector<4x256xf32>
    %84 = arith.addf %78, %83 : vector<4x256xf32>
    %c239_i32 = arith.constant 239 : i32
    %85 = tpu.dynamic_rotate %37 by %c239_i32 dim 1 : vector<4x256xf32>, i32 -> vector<4x256xf32>
    %86 = vector.broadcast %35 : vector<1x256xf32> to vector<4x256xf32>
    %87 = arith.mulf %85, %86 : vector<4x256xf32>
    %88 = vector.broadcast %12 : vector<4x1xf32> to vector<4x256xf32>
    %89 = arith.mulf %87, %88 : vector<4x256xf32>
    %90 = arith.addf %84, %89 : vector<4x256xf32>
    %91 = vector.shape_cast %3 : vector<16x1xf32> to vector<16x1xf32>
    %92 = vector.broadcast %91 : vector<16x1xf32> to vector<16x256xf32>
    %93 = vector.extract_strided_slice %2 {offsets = [0, 0], sizes = [16, 1], strides = [1, 1]} : vector<16x4xf32> to vector<16x1xf32>
    %94 = vector.extract_strided_slice %90 {offsets = [0, 0], sizes = [1, 256], strides = [1, 1]} : vector<4x256xf32> to vector<1x256xf32>
    %95 = vector.broadcast %93 : vector<16x1xf32> to vector<16x256xf32>
    %96 = vector.broadcast %94 : vector<1x256xf32> to vector<16x256xf32>
    %97 = arith.mulf %95, %96 : vector<16x256xf32>
    %98 = arith.addf %92, %97 : vector<16x256xf32>
    %99 = vector.extract_strided_slice %2 {offsets = [0, 1], sizes = [16, 1], strides = [1, 1]} : vector<16x4xf32> to vector<16x1xf32>
    %100 = vector.extract_strided_slice %90 {offsets = [1, 0], sizes = [1, 256], strides = [1, 1]} : vector<4x256xf32> to vector<1x256xf32>
    %101 = vector.broadcast %99 : vector<16x1xf32> to vector<16x256xf32>
    %102 = vector.broadcast %100 : vector<1x256xf32> to vector<16x256xf32>
    %103 = arith.mulf %101, %102 : vector<16x256xf32>
    %104 = arith.addf %98, %103 : vector<16x256xf32>
    %105 = vector.extract_strided_slice %2 {offsets = [0, 2], sizes = [16, 1], strides = [1, 1]} : vector<16x4xf32> to vector<16x1xf32>
    %106 = vector.extract_strided_slice %90 {offsets = [2, 0], sizes = [1, 256], strides = [1, 1]} : vector<4x256xf32> to vector<1x256xf32>
    %107 = vector.broadcast %105 : vector<16x1xf32> to vector<16x256xf32>
    %108 = vector.broadcast %106 : vector<1x256xf32> to vector<16x256xf32>
    %109 = arith.mulf %107, %108 : vector<16x256xf32>
    %110 = arith.addf %104, %109 : vector<16x256xf32>
    %111 = vector.extract_strided_slice %2 {offsets = [0, 3], sizes = [16, 1], strides = [1, 1]} : vector<16x4xf32> to vector<16x1xf32>
    %112 = vector.extract_strided_slice %90 {offsets = [3, 0], sizes = [1, 256], strides = [1, 1]} : vector<4x256xf32> to vector<1x256xf32>
    %113 = vector.broadcast %111 : vector<16x1xf32> to vector<16x256xf32>
    %114 = vector.broadcast %112 : vector<1x256xf32> to vector<16x256xf32>
    %115 = arith.mulf %113, %114 : vector<16x256xf32>
    %116 = arith.addf %110, %115 : vector<16x256xf32>
    %cst = arith.constant 0.000000e+00 : f32
    %117 = vector.broadcast %cst : f32 to vector<16x256xf32>
    %118 = arith.maximumf %116, %117 : vector<16x256xf32>
    %c0_14 = arith.constant 0 : index
    %c0_15 = arith.constant 0 : index
    %c0_16 = arith.constant 0 : index
    %119 = vector.load %arg6[%c0_14, %c0_15, %c0_16] : memref<2x16x256xf32, #tpu.memory_space<vmem>>, vector<1x16x256xf32>
    %120 = vector.shape_cast %119 : vector<1x16x256xf32> to vector<16x256xf32>
    %121 = vector.shape_cast %118 : vector<16x256xf32> to vector<1x16x256xf32>
    tpu.vector_store %arg6[%c0_14, %c0_15, %c0_16], %121 {strides = array<i32>} : memref<2x16x256xf32, #tpu.memory_space<vmem>>, vector<1x16x256xf32>,
    %c1 = arith.constant 1 : index
    %c0_17 = arith.constant 0 : index
    %c0_18 = arith.constant 0 : index
    %122 = vector.load %arg1[%c1, %c0_17, %c0_18] : memref<2x4x256xf32, #tpu.memory_space<vmem>>, vector<1x4x256xf32>
    %123 = vector.shape_cast %122 : vector<1x4x256xf32> to vector<4x256xf32>
    %124 = vector.shape_cast %1 : vector<4x1xf32> to vector<4x1xf32>
    %125 = vector.broadcast %124 : vector<4x1xf32> to vector<4x256xf32>
    %c17_i32_19 = arith.constant 17 : i32
    %126 = tpu.dynamic_rotate %123 by %c17_i32_19 dim 1 : vector<4x256xf32>, i32 -> vector<4x256xf32>
    %127 = vector.broadcast %32 : vector<1x256xf32> to vector<4x256xf32>
    %128 = arith.mulf %126, %127 : vector<4x256xf32>
    %129 = vector.broadcast %4 : vector<4x1xf32> to vector<4x256xf32>
    %130 = arith.mulf %128, %129 : vector<4x256xf32>
    %131 = arith.addf %125, %130 : vector<4x256xf32>
    %c16_i32_20 = arith.constant 16 : i32
    %132 = tpu.dynamic_rotate %123 by %c16_i32_20 dim 1 : vector<4x256xf32>, i32 -> vector<4x256xf32>
    %133 = vector.broadcast %19 : vector<1x256xf32> to vector<4x256xf32>
    %134 = arith.mulf %132, %133 : vector<4x256xf32>
    %135 = vector.broadcast %5 : vector<4x1xf32> to vector<4x256xf32>
    %136 = arith.mulf %134, %135 : vector<4x256xf32>
    %137 = arith.addf %131, %136 : vector<4x256xf32>
    %c15_i32_21 = arith.constant 15 : i32
    %138 = tpu.dynamic_rotate %123 by %c15_i32_21 dim 1 : vector<4x256xf32>, i32 -> vector<4x256xf32>
    %139 = vector.broadcast %33 : vector<1x256xf32> to vector<4x256xf32>
    %140 = arith.mulf %138, %139 : vector<4x256xf32>
    %141 = vector.broadcast %6 : vector<4x1xf32> to vector<4x256xf32>
    %142 = arith.mulf %140, %141 : vector<4x256xf32>
    %143 = arith.addf %137, %142 : vector<4x256xf32>
    %c1_i32_22 = arith.constant 1 : i32
    %144 = tpu.dynamic_rotate %123 by %c1_i32_22 dim 1 : vector<4x256xf32>, i32 -> vector<4x256xf32>
    %145 = vector.broadcast %23 : vector<1x256xf32> to vector<4x256xf32>
    %146 = arith.mulf %144, %145 : vector<4x256xf32>
    %147 = vector.broadcast %7 : vector<4x1xf32> to vector<4x256xf32>
    %148 = arith.mulf %146, %147 : vector<4x256xf32>
    %149 = arith.addf %143, %148 : vector<4x256xf32>
    %150 = vector.broadcast %8 : vector<4x1xf32> to vector<4x256xf32>
    %151 = arith.mulf %123, %150 : vector<4x256xf32>
    %152 = arith.addf %149, %151 : vector<4x256xf32>
    %c255_i32_23 = arith.constant 255 : i32
    %153 = tpu.dynamic_rotate %123 by %c255_i32_23 dim 1 : vector<4x256xf32>, i32 -> vector<4x256xf32>
    %154 = vector.broadcast %31 : vector<1x256xf32> to vector<4x256xf32>
    %155 = arith.mulf %153, %154 : vector<4x256xf32>
    %156 = vector.broadcast %9 : vector<4x1xf32> to vector<4x256xf32>
    %157 = arith.mulf %155, %156 : vector<4x256xf32>
    %158 = arith.addf %152, %157 : vector<4x256xf32>
    %c241_i32_24 = arith.constant 241 : i32
    %159 = tpu.dynamic_rotate %123 by %c241_i32_24 dim 1 : vector<4x256xf32>, i32 -> vector<4x256xf32>
    %160 = vector.broadcast %34 : vector<1x256xf32> to vector<4x256xf32>
    %161 = arith.mulf %159, %160 : vector<4x256xf32>
    %162 = vector.broadcast %10 : vector<4x1xf32> to vector<4x256xf32>
    %163 = arith.mulf %161, %162 : vector<4x256xf32>
    %164 = arith.addf %158, %163 : vector<4x256xf32>
    %c240_i32_25 = arith.constant 240 : i32
    %165 = tpu.dynamic_rotate %123 by %c240_i32_25 dim 1 : vector<4x256xf32>, i32 -> vector<4x256xf32>
    %166 = vector.broadcast %27 : vector<1x256xf32> to vector<4x256xf32>
    %167 = arith.mulf %165, %166 : vector<4x256xf32>
    %168 = vector.broadcast %11 : vector<4x1xf32> to vector<4x256xf32>
    %169 = arith.mulf %167, %168 : vector<4x256xf32>
    %170 = arith.addf %164, %169 : vector<4x256xf32>
    %c239_i32_26 = arith.constant 239 : i32
    %171 = tpu.dynamic_rotate %123 by %c239_i32_26 dim 1 : vector<4x256xf32>, i32 -> vector<4x256xf32>
    %172 = vector.broadcast %35 : vector<1x256xf32> to vector<4x256xf32>
    %173 = arith.mulf %171, %172 : vector<4x256xf32>
    %174 = vector.broadcast %12 : vector<4x1xf32> to vector<4x256xf32>
    %175 = arith.mulf %173, %174 : vector<4x256xf32>
    %176 = arith.addf %170, %175 : vector<4x256xf32>
    %177 = vector.shape_cast %3 : vector<16x1xf32> to vector<16x1xf32>
    %178 = vector.broadcast %177 : vector<16x1xf32> to vector<16x256xf32>
    %179 = vector.extract_strided_slice %2 {offsets = [0, 0], sizes = [16, 1], strides = [1, 1]} : vector<16x4xf32> to vector<16x1xf32>
    %180 = vector.extract_strided_slice %176 {offsets = [0, 0], sizes = [1, 256], strides = [1, 1]} : vector<4x256xf32> to vector<1x256xf32>
    %181 = vector.broadcast %179 : vector<16x1xf32> to vector<16x256xf32>
    %182 = vector.broadcast %180 : vector<1x256xf32> to vector<16x256xf32>
    %183 = arith.mulf %181, %182 : vector<16x256xf32>
    %184 = arith.addf %178, %183 : vector<16x256xf32>
    %185 = vector.extract_strided_slice %2 {offsets = [0, 1], sizes = [16, 1], strides = [1, 1]} : vector<16x4xf32> to vector<16x1xf32>
    %186 = vector.extract_strided_slice %176 {offsets = [1, 0], sizes = [1, 256], strides = [1, 1]} : vector<4x256xf32> to vector<1x256xf32>
    %187 = vector.broadcast %185 : vector<16x1xf32> to vector<16x256xf32>
    %188 = vector.broadcast %186 : vector<1x256xf32> to vector<16x256xf32>
    %189 = arith.mulf %187, %188 : vector<16x256xf32>
    %190 = arith.addf %184, %189 : vector<16x256xf32>
    %191 = vector.extract_strided_slice %2 {offsets = [0, 2], sizes = [16, 1], strides = [1, 1]} : vector<16x4xf32> to vector<16x1xf32>
    %192 = vector.extract_strided_slice %176 {offsets = [2, 0], sizes = [1, 256], strides = [1, 1]} : vector<4x256xf32> to vector<1x256xf32>
    %193 = vector.broadcast %191 : vector<16x1xf32> to vector<16x256xf32>
    %194 = vector.broadcast %192 : vector<1x256xf32> to vector<16x256xf32>
    %195 = arith.mulf %193, %194 : vector<16x256xf32>
    %196 = arith.addf %190, %195 : vector<16x256xf32>
    %197 = vector.extract_strided_slice %2 {offsets = [0, 3], sizes = [16, 1], strides = [1, 1]} : vector<16x4xf32> to vector<16x1xf32>
    %198 = vector.extract_strided_slice %176 {offsets = [3, 0], sizes = [1, 256], strides = [1, 1]} : vector<4x256xf32> to vector<1x256xf32>
    %199 = vector.broadcast %197 : vector<16x1xf32> to vector<16x256xf32>
    %200 = vector.broadcast %198 : vector<1x256xf32> to vector<16x256xf32>
    %201 = arith.mulf %199, %200 : vector<16x256xf32>
    %202 = arith.addf %196, %201 : vector<16x256xf32>
    %cst_27 = arith.constant 0.000000e+00 : f32
    %203 = vector.broadcast %cst_27 : f32 to vector<16x256xf32>
    %204 = arith.maximumf %202, %203 : vector<16x256xf32>
    %c1_28 = arith.constant 1 : index
    %c0_29 = arith.constant 0 : index
    %c0_30 = arith.constant 0 : index
    %205 = vector.load %arg6[%c1_28, %c0_29, %c0_30] : memref<2x16x256xf32, #tpu.memory_space<vmem>>, vector<1x16x256xf32>
    %206 = vector.shape_cast %205 : vector<1x16x256xf32> to vector<16x256xf32>
    %207 = vector.shape_cast %204 : vector<16x256xf32> to vector<1x16x256xf32>
    tpu.vector_store %arg6[%c1_28, %c0_29, %c0_30], %207 {strides = array<i32>} : memref<2x16x256xf32, #tpu.memory_space<vmem>>, vector<1x16x256xf32>,
    return
  }
  func.func @transform_0(%arg0: i32) -> (i32, i32, i32) {
    %c0_i32 = arith.constant 0 : i32
    %c0_i32_0 = arith.constant 0 : i32
    %c0_i32_1 = arith.constant 0 : i32
    return %arg0, %c0_i32, %c0_i32_0 : i32, i32, i32
  }
  func.func @transform_1(%arg0: i32) -> (i32, i32) {
    %c0_i32 = arith.constant 0 : i32
    %c0_i32_0 = arith.constant 0 : i32
    %c0_i32_1 = arith.constant 0 : i32
    return %c0_i32, %c0_i32_0 : i32, i32
  }
  func.func @transform_2(%arg0: i32) -> (i32, i32) {
    %c0_i32 = arith.constant 0 : i32
    %c0_i32_0 = arith.constant 0 : i32
    %c0_i32_1 = arith.constant 0 : i32
    return %c0_i32, %c0_i32_0 : i32, i32
  }
  func.func @transform_3(%arg0: i32) -> (i32, i32) {
    %c0_i32 = arith.constant 0 : i32
    %c0_i32_0 = arith.constant 0 : i32
    %c0_i32_1 = arith.constant 0 : i32
    return %c0_i32, %c0_i32_0 : i32, i32
  }
  func.func @transform_4(%arg0: i32) -> (i32, i32) {
    %c0_i32 = arith.constant 0 : i32
    %c0_i32_0 = arith.constant 0 : i32
    %c0_i32_1 = arith.constant 0 : i32
    return %c0_i32, %c0_i32_0 : i32, i32
  }
  func.func @transform_5(%arg0: i32) -> (i32, i32, i32) {
    %c0_i32 = arith.constant 0 : i32
    %c0_i32_0 = arith.constant 0 : i32
    %c0_i32_1 = arith.constant 0 : i32
    return %arg0, %c0_i32, %c0_i32_0 : i32, i32, i32
  }
}

</mosaic_0001>

<bundles_post_ra>
// kernel: xconv_bn_relu.1
= control target key start
LH: loop header
LB: loop body
LE: loop exit
PB: predicated region body
PF: predicated region fallthrough
CT: control target
= control target key end

     0   :  { %v574_v0 = vmov 0   ;;  %v575_v3 = vmov 1   ;;  %s576_s22 = smov 17   ;;  %v578_v5 = vmov 4   ;;  %v579_v6 = vmov 2   ;;  %s580_s23 = smov 15   ;;  %s1004_s1 = inlined_call_operand.vmem [shape: f32[4,9], index: 1, kind: input, shape index: {}]   ;;  %s1005_s0 = inlined_call_operand.vmem [shape: f32[2,4,256], index: 0, kind: input, shape index: {}]   ;;  %s1006_s2 = inlined_call_operand.vmem [shape: f32[4,1], index: 2, kind: input, shape index: {}]   ;;  %s1007_s3 = inlined_call_operand.vmem [shape: f32[16,4], index: 3, kind: input, shape index: {}]   ;;  %s1008_s4 = inlined_call_operand.vmem [shape: f32[16,1], index: 4, kind: input, shape index: {}]   ;;  %s1009_s5 = inlined_call_operand.vmem [shape: f32[2,16,256], index: 5, kind: output, shape index: {}]  }
   0x1   :  { %556 = vset.pattern.permute.xlu1 %v574_v0  ;;  %v627_v1 = vld [vmem:[%s1004_s1] sm:$0xf]  ;;  %557 = vset.pattern.permute.xlu0 %v575_v3  ;;  %s577_s1 = smov 16   ;;  %v581_v7 = vmov 3   ;;  %s582_s24 = smov 1   ;;  %v663_v8 = vld [vmem:[%s1005_s0 + $0x8] sm:$0xff]  ;;  %v26_v19 = vlaneseq }
   0x2   :  { %v632_v2 = vld [vmem:[%s1005_s0] sm:$0xff]  ;;  %83 = vperm.xlu1 %556, %v627_v1   ;;  %s583_s25 = smov 127   ;;  %v584_v9 = vmov 7   ;;  %s585_s28 = smov 113   ;;  %v345_v10 = vcombine.high %v663_v8, %v663_v8  ;;  %v586_v11 = vmov 5   ;;  %v587_v12 = vmov 6  }
   0x3   :  { %72 = vrot.lane.b32.xlu0 %v632_v2, %s576_s22  ;;  %v640_v4 = vcombine.high %v632_v2, %v632_v2  ;;  %v21_v13 = vld [vmem:[%s1006_s2] sm:$0xf]  ;;  %v588_v14 = vmov 8   ;;  %s589_s30 = smov 112   ;;  %s590_s2 = smov 111   ;;  %v25_v16 = vld [vmem:[%s1008_s4 + $0x8] sm:$0xff] }
   0x4   :  { %v22_v15 = vld [vmem:[%s1007_s3] sm:$0xff]  ;;  %v23_v17 = vld [vmem:[%s1007_s3 + $0x8] sm:$0xff]  ;;  %v724_v20 = vand.u32 127, %v26_v19  ;;  %v591_v25 = vmov 0.0  }
   0x5   :  { %v24_v18 = vld [vmem:[%s1008_s4] sm:$0xff] }
   0x6   :  { %74 = vrot.lane.b32.xlu1 %v640_v4, %s576_s22  ;;  %v727_v21 = vadd.s32 128, %v724_v20  ;;  %v29_v22 = vand.u32 15, %v724_v20  ;;  %vm31_vm0 = vcmp.ge.s32.totalorder %v724_v20, 16  ;;  %vm76_vm3 = vcmp.lt.s32.totalorder %v724_v20, 17 }
   0x7   :  { %90 = vrot.lane.b32.xlu0 %v632_v2, %s577_s1  ;;  %560 = vset.pattern.permute.xlu1 %v578_v5  ;;  %v733_v26 = vsel %vm31_vm0, 1.0, %v591_v25  ;;  %vm94_vm5 = vcmp.lt.s32.totalorder %v724_v20, 16  ;;  %vm111_vm7 = vcmp.lt.s32.totalorder %v724_v20, 15  ;;  %vm128_vm8 = vcmp.lt.s32.totalorder %v724_v20, 1 }
   0x8   :  { %v30_v23 = vand.u32 15, %v727_v21  ;;  %vm37_vm1 = vcmp.ge.s32.totalorder %v29_v22, 1  ;;  %vm49_vm4 = vcmp.le.s32.totalorder %v29_v22, 14  ;;  %vm162_vm9 = vcmp.lt.s32.totalorder %v724_v20, 127 }
   0x9   :  { %v736_v27 = vsel %vm37_vm1, 1.0, %v591_v25  ;;  %v776_v57 = vsel %vm49_vm4, 1.0, %v591_v25  ;;  %vm44_vm10 = vcmp.lt.s32.totalorder %v727_v21, 240  ;;  %vm179_vm11 = vcmp.lt.s32.totalorder %v724_v20, 113 }
   0xa   :  { %92 = vrot.lane.b32.xlu1 %v640_v4, %s577_s1  ;;  %vm38_vm2 = vcmp.ge.s32.totalorder %v30_v23, 1  ;;  %v742_v29 = vmul.f32 %v736_v27, %v733_v26  ;;  %vm50_vm6 = vcmp.le.s32.totalorder %v30_v23, 14  ;;  %v57_v60 = vmul.f32 %v776_v57, %v733_v26 }
   0xb   :  { %100 = vperm.xlu0 %557, %v627_v1   ;;  %v746_v30 = vsel %vm38_vm2, 1.0, %v591_v25  ;;  %v786_v62 = vsel %vm50_vm6, 1.0, %v591_v25  ;;  %vm196_vm12 = vcmp.lt.s32.totalorder %v724_v20, 112  ;;  %vm213_vm13 = vcmp.lt.s32.totalorder %v724_v20, 111 }
   0xe   :  { %107 = vrot.lane.b32.xlu1 %v632_v2, %s580_s23 }
   0xf   :  { %558 = vset.pattern.permute.xlu0 %v579_v6 }
  0x10   :  { %117 = vperm.xlu0 %558, %v627_v1  }
  0x12   :  { %109 = vrot.lane.b32.xlu1 %v640_v4, %s580_s23 }
  0x14   :  { %559 = vset.pattern.permute.xlu0 %v581_v7 }
  0x15   :  { %134 = vperm.xlu0 %559, %v627_v1  }
  0x16   :  { %124 = vrot.lane.b32.xlu1 %v632_v2, %s582_s24 }
  0x19   :  { %160 = vrot.lane.b32.xlu0 %v640_v4, %s583_s25 }
  0x1a   :  { %563 = vset.pattern.permute.xlu0 %v584_v9  ;;  %126 = vrot.lane.b32.xlu1 %v640_v4, %s582_s24 }
  0x1d   :  { %175 = vrot.lane.b32.xlu0 %v632_v2, %s585_s28 }
  0x1e   :  { %142 = vperm.xlu1 %560, %v627_v1  }
  0x21   :  { %349 = vrot.lane.b32.xlu0 %v345_v10, %s576_s22 }
  0x22   :  { %158 = vrot.lane.b32.xlu1 %v632_v2, %s583_s25 }
  0x23   :  { %561 = vset.pattern.permute.xlu1 %v586_v11 }
  0x25   :  { %361 = vrot.lane.b32.xlu0 %v345_v10, %s577_s1 }
  0x26   :  { %168 = vperm.xlu1 %561, %v627_v1  }
  0x29   :  { %373 = vrot.lane.b32.xlu0 %v345_v10, %s580_s23 }
  0x2a   :  { %347 = vrot.lane.b32.xlu1 %v663_v8, %s576_s22 }
  0x2b   :  { %562 = vset.pattern.permute.xlu1 %v587_v12 }
  0x2d   :  { %385 = vrot.lane.b32.xlu0 %v345_v10, %s582_s24 }
  0x2e   :  { %359 = vrot.lane.b32.xlu1 %v663_v8, %s577_s1 }
  0x31   :  { %202 = vperm.xlu0 %563, %v627_v1  }
  0x32   :  { %371 = vrot.lane.b32.xlu1 %v663_v8, %s580_s23 }
  0x35   :  { %564 = vset.pattern.permute.xlu0 %v574_v0 }
  0x36   :  { %66 = vperm.xlu0 %564, %v21_v13   ;;  %383 = vrot.lane.b32.xlu1 %v663_v8, %s582_s24 }
  0x3a   :  { %177 = vrot.lane.b32.xlu0 %v640_v4, %s585_s28  ;;  %185 = vperm.xlu1 %562, %v627_v1  }
  0x3e   :  { %413 = vrot.lane.b32.xlu0 %v663_v8, %s585_s28  ;;  %401 = vrot.lane.b32.xlu1 %v663_v8, %s583_s25 }
  0x3f   :  { %565 = vset.pattern.permute.xlu1 %v588_v14  ;;  %v592_v14 = vmov 839922192  }
  0x42   :  { %192 = vrot.lane.b32.xlu0 %v632_v2, %s589_s30  ;;  %403 = vrot.lane.b32.xlu1 %v345_v10, %s583_s25 }
  0x46   :  { %425 = vrot.lane.b32.xlu0 %v663_v8, %s589_s30  ;;  %219 = vperm.xlu1 %565, %v627_v1  }
  0x4a   :  { %209 = vrot.lane.b32.xlu0 %v632_v2, %s590_s2  ;;  %415 = vrot.lane.b32.xlu1 %v345_v10, %s585_s28 }
  0x4b   :  { %566 = vset.pattern.permute.xlu1 %v574_v0 }
  0x4e   :  { %437 = vrot.lane.b32.xlu0 %v663_v8, %s590_s2  ;;  %194 = vrot.lane.b32.xlu1 %v640_v4, %s589_s30 }
  0x52   :  { %238 = vperm.xlu0 %564, %v22_v15   ;;  %427 = vrot.lane.b32.xlu1 %v345_v10, %s589_s30 }
  0x56   :  { %233 = vperm.xlu0 %564, %v25_v16   ;;  %211 = vrot.lane.b32.xlu1 %v640_v4, %s590_s2 }
  0x5a   :  { %568 = vset.pattern.permute.xlu0 %v575_v3  ;;  %439 = vrot.lane.b32.xlu1 %v345_v10, %s590_s2 }
  0x5b   :  { %267 = vperm.xlu0 %568, %v23_v17  }
  0x5e   :  { %243 = vperm.xlu1 %566, %v23_v17  }
  0x5f   :  { %570 = vset.pattern.permute.xlu0 %v581_v7 }
  0x60   :  { %311 = vperm.xlu0 %570, %v22_v15  }
  0x62   :  { %228 = vperm.xlu1 %566, %v24_v18  }
  0x66   :  { %567 = vset.pattern.permute.xlu1 %v575_v3 }
  0x67   :  { %263 = vperm.xlu1 %567, %v22_v15  }
  0x6b   :  { %569 = vset.pattern.permute.xlu1 %v579_v6 }
  0x6c   :  { %287 = vperm.xlu1 %569, %v22_v15   ;;  %v145_v15 = vunpack.c.l.s4 %v592_v14 }
  0x70   :  { %291 = vperm.xlu1 %569, %v23_v17  }
  0x74   :  { %571 = vset.pattern.permute.xlu1 %v581_v7 }
  0x75   :  { %315 = vperm.xlu1 %571, %v23_v17   ;;  %v73_v24 = vpop.permute.xlu0 %72 }
  0x79   :  { %v91_v31 = vpop.permute.xlu0 %90 }
  0x81   :  { %v738_v28 = vpop.permute.xlu1 %83 }
  0x85   :  { %v75_v32 = vpop.permute.xlu1 %74 }
  0x86   :  { %v77_v33 = vsel %vm76_vm3, %v73_v24, %v75_v32  ;;  %v78_v34 = vsel %vm76_vm3, %v75_v32, %v73_v24 }
  0x87   :  { %v79_v35 = vmul.f32 %v78_v34, %v742_v29  ;;  %v80_v36 = vmul.f32 %v746_v30, %v77_v33  ;;  %v146_v33 = vunpack.c.0.s8 %v145_v15  ;;  %v806_v34 = vshrl.u32 %v26_v19, 7 }
  0x89   :  { %v86_v37 = vmul.f32 %v738_v28, %v79_v35  ;;  %v87_v38 = vmul.f32 %v738_v28, %v80_v36  ;;  %v93_v39 = vpop.permute.xlu1 %92 }
  0x8a   :  { %v756_v40 = vpop.permute.xlu0 %100  ;;  %v96_v59 = vsel %vm94_vm5, %v93_v39, %v91_v31  ;;  %v95_v4 = vsel %vm94_vm5, %v91_v31, %v93_v39 }
  0x8b   :  { %v97_v1 = vmul.f32 %v733_v26, %v96_v59  ;;  %v104_v10 = vmul.f32 %v756_v40, %v95_v4  ;;  %v149_v59 = vsub.s32 %v146_v33, %v806_v34 }
  0x8d   :  { %v108_v41 = vpop.permute.xlu1 %107  ;;  %v103_v9 = vmul.f32 %v756_v40, %v97_v1 }
  0x8f   :  { %v758_v42 = vpop.permute.xlu0 %117 }
  0x91   :  { %v110_v43 = vpop.permute.xlu1 %109 }
  0x92   :  { %v112_v63 = vsel %vm111_vm7, %v108_v41, %v110_v43  ;;  %v113_v0 = vsel %vm111_vm7, %v110_v43, %v108_v41 }
  0x93   :  { %v114_v5 = vmul.f32 %v113_v0, %v57_v60  ;;  %v115_v6 = vmul.f32 %v786_v62, %v112_v63 }
  0x94   :  { %v760_v44 = vpop.permute.xlu0 %134 }
  0x95   :  { %v125_v45 = vpop.permute.xlu1 %124  ;;  %v120_v16 = vmul.f32 %v758_v42, %v114_v5  ;;  %v121_v17 = vmul.f32 %v758_v42, %v115_v6 }
  0x98   :  { %v762_v46 = vpop.permute.xlu0 %160 }
  0x99   :  { %v127_v47 = vpop.permute.xlu1 %126 }
  0x9a   :  { %v129_v19 = vsel %vm128_vm8, %v125_v45, %v127_v47 }
  0x9c   :  { %v764_v48 = vpop.permute.xlu0 %175 }
  0x9d   :  { %v766_v49 = vpop.permute.xlu1 %142 }
  0x9e   :  { %v150_v4 = vrot.slane %v766_v49, %v149_v59 }
  0xa0   :  { %v350_v50 = vpop.permute.xlu0 %349 }
  0xa1   :  { %v768_v51 = vpop.permute.xlu1 %158 }
  0xa4   :  { %v362_v52 = vpop.permute.xlu0 %361 }
  0xa5   :  { %v770_v53 = vpop.permute.xlu1 %168 }
  0xa8   :  { %v374_v54 = vpop.permute.xlu0 %373 }
  0xa9   :  { %v348_v55 = vpop.permute.xlu1 %347 }
  0xaa   :  { %v351_v35 = vsel %vm76_vm3, %v348_v55, %v350_v50  ;;  %v352_v36 = vsel %vm76_vm3, %v350_v50, %v348_v55 }
  0xab   :  { %v353_v39 = vmul.f32 %v352_v36, %v742_v29  ;;  %v354_v41 = vmul.f32 %v746_v30, %v351_v35  ;;  %v132_v29 = vmul.f32 %v746_v30, %v129_v19 }
  0xac   :  { %v773_v56 = vpop.permute.xlu0 %385 }
  0xad   :  { %v360_v58 = vpop.permute.xlu1 %359  ;;  %v355_v0 = vmul.f32 %v353_v39, %v738_v28  ;;  %v356_v1 = vmul.f32 %v354_v41, %v738_v28 }
  0xae   :  { %v364_v63 = vsel %vm94_vm5, %v362_v52, %v360_v58  ;;  %v363_v5 = vsel %vm94_vm5, %v360_v58, %v362_v52  ;;  %v852_v52 = vsel %vm44_vm10, 1.0, %v591_v25  ;;  %v164_v25 = vsel %vm162_vm9, %v762_v46, %v768_v51 }
  0xb0   :  { %v783_v61 = vpop.permute.xlu0 %202 }
  0xb1   :  { %v372_v3 = vpop.permute.xlu1 %371 }
  0xb2   :  { %v375_v6 = vsel %vm111_vm7, %v372_v3, %v374_v54 }
  0xb5   :  { %v67_v7 = vpop.permute.xlu0 %66  ;;  %v384_v13 = vpop.permute.xlu1 %383 }
  0xb6   :  { %v88_v11 = vadd.f32 %v86_v37, %v67_v7  ;;  %v89_v12 = vadd.f32 %v87_v38, %v67_v7  ;;  %v130_v38 = vsel %vm128_vm8, %v127_v47, %v125_v45  ;;  %v365_v45 = vmul.f32 %v733_v26, %v364_v63 }
  0xb7   :  { %v131_v50 = vmul.f32 %v736_v27, %v130_v38  ;;  %v388_v28 = vsel %vm128_vm8, %v773_v56, %v384_v13  ;;  %v163_v26 = vsel %vm162_vm9, %v768_v51, %v762_v46  ;;  %v387_v49 = vsel %vm128_vm8, %v384_v13, %v773_v56 }
  0xb8   :  { %v105_v18 = vadd.f32 %v103_v9, %v88_v11  ;;  %v106_v22 = vadd.f32 %v104_v10, %v89_v12  ;;  %v376_v9 = vsel %vm111_vm7, %v374_v54, %v372_v3  ;;  %v357_v10 = vadd.f32 %v355_v0, %v67_v7 }
  0xb9   :  { %v800_v23 = vpop.permute.xlu0 %177  ;;  %v803_v32 = vpop.permute.xlu1 %185  ;;  %v358_v11 = vadd.f32 %v356_v1, %v67_v7  ;;  %v367_v58 = vmul.f32 %v365_v45, %v756_v40  ;;  %v368_v3 = vmul.f32 %v363_v5, %v756_v40  ;;  %v377_v7 = vmul.f32 %v376_v9, %v57_v60 }
  0xba   :  { %v122_v24 = vadd.f32 %v120_v16, %v105_v18  ;;  %v123_v31 = vadd.f32 %v121_v17, %v106_v22  ;;  %v378_v12 = vmul.f32 %v786_v62, %v375_v6  ;;  %v137_v15 = vmul.f32 %v760_v44, %v131_v50 }
  0xbb   :  { %v138_v56 = vmul.f32 %v760_v44, %v132_v29  ;;  %v152_v13 = vmul.f32 %v150_v4, %v632_v2  ;;  %v389_v21 = vmul.f32 %v736_v27, %v388_v28  ;;  %v369_v16 = vadd.f32 %v367_v58, %v357_v10 }
  0xbc   :  { %v370_v40 = vadd.f32 %v368_v3, %v358_v11  ;;  %v390_v60 = vmul.f32 %v746_v30, %v387_v49  ;;  %v165_v17 = vmul.f32 %v776_v57, %v163_v26  ;;  %v60_v18 = vmul.f32 %v852_v52, %v746_v30 }
  0xbd   :  { %v812_v37 = vpop.permute.xlu0 %413  ;;  %v402_v43 = vpop.permute.xlu1 %401  ;;  %v379_v2 = vmul.f32 %v377_v7, %v758_v42  ;;  %v380_v33 = vmul.f32 %v378_v12, %v758_v42  ;;  %v139_v35 = vadd.f32 %v137_v15, %v122_v24  ;;  %v140_v36 = vadd.f32 %v138_v56, %v123_v31 }
  0xbe   :  { %v154_v46 = vcombine.high %v152_v13, %v152_v13  ;;  %v166_v51 = vmul.f32 %v786_v62, %v164_v25  ;;  %v391_v39 = vmul.f32 %v389_v21, %v760_v44  ;;  %v392_v30 = vmul.f32 %v390_v60, %v760_v44 }
  0xbf   :  { %v381_v41 = vadd.f32 %v379_v2, %v369_v16  ;;  %v382_v19 = vadd.f32 %v380_v33, %v370_v40  ;;  %v180_v59 = vsel %vm179_vm11, %v764_v48, %v800_v23  ;;  %v395_v42 = vmul.f32 %v663_v8, %v150_v4 }
  0xc0   :  { %v171_v24 = vmul.f32 %v770_v53, %v165_v17  ;;  %v181_v31 = vsel %vm179_vm11, %v800_v23, %v764_v48  ;;  %v157_v50 = vadd.f32 %v154_v46, %v140_v36  ;;  %v156_v0 = vadd.f32 %v152_v13, %v139_v35 }
  0xc1   :  { %v826_v55 = vpop.permute.xlu0 %192  ;;  %v404_v47 = vpop.permute.xlu1 %403  ;;  %v172_v8 = vmul.f32 %v770_v53, %v166_v51  ;;  %v182_v45 = vmul.f32 %v736_v27, %v180_v59  ;;  %v393_v23 = vadd.f32 %v391_v39, %v381_v41  ;;  %v394_v5 = vadd.f32 %v392_v30, %v382_v19 }
  0xc2   :  { %v405_v44 = vsel %vm162_vm9, %v402_v43, %v404_v47  ;;  %v406_v29 = vsel %vm162_vm9, %v404_v47, %v402_v43  ;;  %v183_v6 = vmul.f32 %v181_v31, %v60_v18  ;;  %v397_v47 = vcombine.high %v395_v42, %v395_v42 }
  0xc3   :  { %v407_v9 = vmul.f32 %v776_v57, %v405_v44  ;;  %v408_v10 = vmul.f32 %v786_v62, %v406_v29  ;;  %v174_v28 = vadd.f32 %v172_v8, %v157_v50  ;;  %v173_v49 = vadd.f32 %v171_v24, %v156_v0 }
  0xc4   :  { %v62_v15 = vmul.f32 %v786_v62, %v852_v52  ;;  %v189_v56 = vmul.f32 %v803_v32, %v183_v6  ;;  %v399_v13 = vadd.f32 %v395_v42, %v393_v23  ;;  %v400_v21 = vadd.f32 %v397_v47, %v394_v5 }
  0xc5   :  { %v854_v54 = vpop.permute.xlu0 %425  ;;  %v859_v14 = vpop.permute.xlu1 %219  ;;  %v410_v25 = vmul.f32 %v408_v10, %v770_v53  ;;  %v248_v39 = vsub.s32 0, %v806_v34 }
  0xc6   :  { %v191_v60 = vadd.f32 %v189_v56, %v174_v28 }
  0xc7   :  { %v412_v41 = vadd.f32 %v410_v25, %v400_v21 }
  0xc9   :  { %v210_v22 = vpop.permute.xlu0 %209  ;;  %v416_v38 = vpop.permute.xlu1 %415 }
  0xca   :  { %v417_v4 = vsel %vm179_vm11, %v812_v37, %v416_v38  ;;  %v418_v43 = vsel %vm179_vm11, %v416_v38, %v812_v37 }
  0xcb   :  { %v419_v26 = vmul.f32 %v736_v27, %v417_v4  ;;  %v420_v12 = vmul.f32 %v418_v43, %v60_v18  ;;  %v188_v27 = vmul.f32 %v803_v32, %v182_v45  ;;  %v320_v4 = vsub.s32 3, %v806_v34 }
  0xcd   :  { %v890_v63 = vpop.permute.xlu0 %437  ;;  %v195_v1 = vpop.permute.xlu1 %194  ;;  %v421_v17 = vmul.f32 %v419_v26, %v803_v32  ;;  %v190_v62 = vadd.f32 %v188_v27, %v173_v49  ;;  %v422_v33 = vmul.f32 %v420_v12, %v803_v32  ;;  %v296_v27 = vsub.s32 2, %v806_v34 }
  0xce   :  { %v198_v48 = vsel %vm196_vm12, %v195_v1, %v826_v55  ;;  %v197_v58 = vsel %vm196_vm12, %v826_v55, %v195_v1  ;;  %v409_v55 = vmul.f32 %v407_v9, %v770_v53 }
  0xcf   :  { %v200_v11 = vmul.f32 %v852_v52, %v198_v48  ;;  %v205_v16 = vmul.f32 %v783_v61, %v197_v58  ;;  %v424_v31 = vadd.f32 %v422_v33, %v412_v41 }
  0xd0   :  { %v411_v32 = vadd.f32 %v409_v55, %v399_v13 }
  0xd1   :  { %v914_v3 = vpop.permute.xlu0 %238  ;;  %v428_v7 = vpop.permute.xlu1 %427  ;;  %v206_v40 = vmul.f32 %v783_v61, %v200_v11  ;;  %v207_v19 = vadd.f32 %v205_v16, %v190_v62 }
  0xd2   :  { %v430_v37 = vsel %vm196_vm12, %v428_v7, %v854_v54  ;;  %v429_v35 = vsel %vm196_vm12, %v854_v54, %v428_v7  ;;  %v423_v50 = vadd.f32 %v421_v17, %v411_v32 }
  0xd3   :  { %v432_v18 = vmul.f32 %v852_v52, %v430_v37  ;;  %v272_v52 = vsub.s32 1, %v806_v34  ;;  %v208_v30 = vadd.f32 %v206_v40, %v191_v60  ;;  %v433_v54 = vmul.f32 %v429_v35, %v783_v61 }
  0xd5   :  { %v212_v2 = vpop.permute.xlu1 %211  ;;  %v938_v38 = vpop.permute.xlu0 %233  ;;  %v434_v59 = vmul.f32 %v432_v18, %v783_v61  ;;  %v435_v48 = vadd.f32 %v433_v54, %v423_v50 }
  0xd6   :  { %v214_v53 = vsel %vm213_vm13, %v210_v22, %v212_v2  ;;  %v215_v36 = vsel %vm213_vm13, %v212_v2, %v210_v22 }
  0xd7   :  { %v216_v46 = vmul.f32 %v776_v57, %v214_v53  ;;  %v217_v51 = vmul.f32 %v215_v36, %v62_v15  ;;  %v436_v23 = vadd.f32 %v434_v59, %v424_v31 }
  0xd9   :  { %v222_v42 = vmul.f32 %v859_v14, %v216_v46  ;;  %v223_v22 = vmul.f32 %v859_v14, %v217_v51  ;;  %v440_v24 = vpop.permute.xlu1 %439 }
  0xda   :  { %v441_v44 = vsel %vm213_vm13, %v890_v63, %v440_v24  ;;  %v442_v29 = vsel %vm213_vm13, %v440_v24, %v890_v63  ;;  %v954_v45 = vpop.permute.xlu0 %267 }
  0xdb   :  { %v224_v0 = vadd.f32 %v222_v42, %v207_v19  ;;  %v225_v1 = vadd.f32 %v223_v22, %v208_v30  ;;  %v443_v8 = vmul.f32 %v776_v57, %v441_v44  ;;  %v444_v61 = vmul.f32 %v442_v29, %v62_v15 }
  0xdd   :  { %v445_v5 = vmul.f32 %v443_v8, %v859_v14  ;;  %v446_v6 = vmul.f32 %v444_v61, %v859_v14  ;;  %v244_v43 = vpop.permute.xlu1 %243  ;;  %v249_v47 = vrot.slane %v224_v0, %v248_v39  ;;  %v253_v9 = vrot.slane %v225_v1, %v248_v39 }
  0xde   :  { %v273_v10 = vrot.slane %v224_v0, %v272_v52  ;;  %v277_v11 = vrot.slane %v225_v1, %v272_v52  ;;  %v959_v28 = vrot.slane %v224_v0, %v320_v4  ;;  %v961_v57 = vrot.slane %v225_v1, %v320_v4 }
  0xdf   :  { %v447_v20 = vadd.f32 %v445_v5, %v435_v48  ;;  %v448_v63 = vadd.f32 %v446_v6, %v436_v23  ;;  %v312_v58 = vpop.permute.xlu0 %311  ;;  %v256_v12 = vmul.f32 %v249_v47, %v244_v43  ;;  %v257_v37 = vmul.f32 %v253_v9, %v244_v43 }
  0xe0   :  { %v280_v15 = vmul.f32 %v273_v10, %v954_v45  ;;  %v281_v14 = vmul.f32 %v277_v11, %v954_v45  ;;  %v326_v21 = vmul.f32 %v959_v28, %v312_v58  ;;  %v327_v55 = vmul.f32 %v961_v57, %v312_v58 }
  0xe1   :  { %v452_v26 = vrot.slane %v447_v20, %v248_v39  ;;  %v456_v49 = vrot.slane %v448_v63, %v248_v39  ;;  %v229_v7 = vpop.permute.xlu1 %228  ;;  %v254_v25 = vmul.f32 %v249_v47, %v914_v3  ;;  %v255_v16 = vmul.f32 %v253_v9, %v914_v3 }
  0xe2   :  { %v468_v17 = vrot.slane %v447_v20, %v272_v52  ;;  %v472_v62 = vrot.slane %v448_v63, %v272_v52  ;;  %v260_v18 = vadd.f32 %v256_v12, %v938_v38  ;;  %v261_v34 = vadd.f32 %v257_v37, %v938_v38 }
  0xe3   :  { %v459_v56 = vmul.f32 %v452_v26, %v244_v43  ;;  %v460_v13 = vmul.f32 %v456_v49, %v244_v43  ;;  %v457_v40 = vmul.f32 %v452_v26, %v914_v3  ;;  %v458_v60 = vmul.f32 %v456_v49, %v914_v3 }
  0xe4   :  { %v500_v33 = vrot.slane %v447_v20, %v320_v4  ;;  %v504_v35 = vrot.slane %v448_v63, %v320_v4  ;;  %v258_v41 = vadd.f32 %v254_v25, %v229_v7  ;;  %v259_v19 = vadd.f32 %v255_v16, %v229_v7 }
  0xe5   :  { %v463_v46 = vadd.f32 %v459_v56, %v938_v38  ;;  %v464_v51 = vadd.f32 %v460_v13, %v938_v38  ;;  %v461_v3 = vadd.f32 %v457_v40, %v229_v7  ;;  %v462_v30 = vadd.f32 %v458_v60, %v229_v7 }
  0xe6   :  { %v264_v2 = vpop.permute.xlu1 %263  ;;  %v297_v52 = vrot.slane %v224_v0, %v296_v27  ;;  %v301_v54 = vrot.slane %v225_v1, %v296_v27  ;;  %v484_v59 = vrot.slane %v447_v20, %v296_v27  ;;  %v488_v42 = vrot.slane %v448_v63, %v296_v27 }
  0xe7   :  { %v278_v53 = vmul.f32 %v273_v10, %v264_v2  ;;  %v279_v36 = vmul.f32 %v277_v11, %v264_v2  ;;  %v473_v39 = vmul.f32 %v468_v17, %v264_v2  ;;  %v474_v32 = vmul.f32 %v472_v62, %v264_v2 }
  0xe8   :  { %v475_v38 = vmul.f32 %v468_v17, %v954_v45  ;;  %v476_v48 = vmul.f32 %v472_v62, %v954_v45  ;;  %v505_v23 = vmul.f32 %v500_v33, %v312_v58  ;;  %v506_v5 = vmul.f32 %v504_v35, %v312_v58 }
  0xe9   :  { %v282_v22 = vadd.f32 %v278_v53, %v258_v41  ;;  %v283_v24 = vadd.f32 %v279_v36, %v259_v19  ;;  %v477_v31 = vadd.f32 %v473_v39, %v461_v3  ;;  %v478_v50 = vadd.f32 %v474_v32, %v462_v30 }
  0xea   :  { %v284_v9 = vadd.f32 %v280_v15, %v260_v18  ;;  %v285_v20 = vadd.f32 %v281_v14, %v261_v34  ;;  %v479_v63 = vadd.f32 %v475_v38, %v463_v46  ;;  %v480_v10 = vadd.f32 %v476_v48, %v464_v51 }
  0xeb   :  { %v288_v44 = vpop.permute.xlu1 %287 }
  0xec   :  { %v302_v29 = vmul.f32 %v297_v52, %v288_v44  ;;  %v303_v8 = vmul.f32 %v301_v54, %v288_v44  ;;  %v489_v61 = vmul.f32 %v484_v59, %v288_v44  ;;  %v490_v4 = vmul.f32 %v488_v42, %v288_v44 }
  0xee   :  { %v306_v6 = vadd.f32 %v302_v29, %v282_v22  ;;  %v307_v0 = vadd.f32 %v303_v8, %v283_v24  ;;  %v493_v1 = vadd.f32 %v489_v61, %v477_v31  ;;  %v494_v43 = vadd.f32 %v490_v4, %v478_v50 }
  0xef   :  { %v292_v47 = vpop.permute.xlu1 %291 }
  0xf0   :  { %v330_v11 = vadd.f32 %v326_v21, %v306_v6  ;;  %v331_v26 = vadd.f32 %v327_v55, %v307_v0  ;;  %v509_v49 = vadd.f32 %v505_v23, %v493_v1  ;;  %v510_v7 = vadd.f32 %v506_v5, %v494_v43 }
  0xf1   :  { %v304_v12 = vmul.f32 %v297_v52, %v292_v47  ;;  %v305_v37 = vmul.f32 %v301_v54, %v292_v47  ;;  %v491_v27 = vmul.f32 %v484_v59, %v292_v47  ;;  %v492_v56 = vmul.f32 %v488_v42, %v292_v47 }
  0xf2   :  { %v334_v45 = vmax.f32 %v330_v11, 0.0  ;;  %v335_v13 = vmax.f32 %v331_v26, 0.0  ;;  %v513_v58 = vmax.f32 %v509_v49, 0.0  ;;  %v514_v25 = vmax.f32 %v510_v7, 0.0 }
  0xf3   :  { %v308_v15 = vadd.f32 %v304_v12, %v284_v9  ;;  %v309_v14 = vadd.f32 %v305_v37, %v285_v20  ;;  %v495_v21 = vadd.f32 %v491_v27, %v479_v63  ;;  %v496_v55 = vadd.f32 %v492_v56, %v480_v10 }
  0xf4   :  { %338 = vst [vmem:[%s1009_s5] sm:$0xff] %v334_v45  ;;  %339 = vst [vmem:[%s1009_s5 + $0x8] sm:$0xff] %v335_v13  ;;  %v316_v16 = vpop.permute.xlu1 %315 }
  0xf5   :  { %533 = vst [vmem:[%s1009_s5 + $0x20] sm:$0xff] %v513_v58  ;;  %534 = vst [vmem:[%s1009_s5 + $0x28] sm:$0xff] %v514_v25  ;;  %v328_v40 = vmul.f32 %v959_v28, %v316_v16  ;;  %v329_v60 = vmul.f32 %v961_v57, %v316_v16  ;;  %v507_v17 = vmul.f32 %v500_v33, %v316_v16 }
  0xf6   :  { %v508_v62 = vmul.f32 %v504_v35, %v316_v16 }
  0xf7   :  { %v332_v18 = vadd.f32 %v328_v40, %v308_v15  ;;  %v333_v34 = vadd.f32 %v329_v60, %v309_v14  ;;  %v511_v2 = vadd.f32 %v507_v17, %v495_v21 }
  0xf8   :  { %v512_v53 = vadd.f32 %v508_v62, %v496_v55 }
  0xf9   :  { %v336_v36 = vmax.f32 %v332_v18, 0.0  ;;  %v337_v46 = vmax.f32 %v333_v34, 0.0  ;;  %v515_v51 = vmax.f32 %v511_v2, 0.0 }
  0xfa   :  { %v516_v39 = vmax.f32 %v512_v53, 0.0 }
  0xfb   :  { %340 = vst [vmem:[%s1009_s5 + $0x10] sm:$0xff] %v336_v36  ;;  %341 = vst [vmem:[%s1009_s5 + $0x18] sm:$0xff] %v337_v46 }
  0xfc   :  { %535 = vst [vmem:[%s1009_s5 + $0x30] sm:$0xff] %v515_v51  ;;  %536 = vst [vmem:[%s1009_s5 + $0x38] sm:$0xff] %v516_v39 }

</bundles_post_ra>
